<compile_context>
chip_gen: v6e
topology: v6e:2x2x1
jax: 0.10.0
libtpu: 0.0.40
codegen_flags: <defaults>
</compile_context>

<pallas_src>
import functools

import jax
import jax.numpy as jnp
from jax import lax
from jax.experimental import pallas as pl
from jax.experimental.pallas import tpu as pltpu


# ---------------------------------------------------------------------------
# Helpers
# ---------------------------------------------------------------------------
def _vmem_budget_bytes():
    """Generation-aware scoped VMEM budget: ~3/4 of physical, capped at 100 MiB.
    (v5e/v6e: 128 MiB physical -> ~96 MiB; v7x: 64 MiB physical -> 48 MiB)."""
    cap = 128 * 1024 * 1024
    try:
        info = pltpu.get_tpu_info()
        cap = int(getattr(info, "vmem_capacity_bytes", cap) or cap)
    except Exception:
        pass
    return int(min(cap * 3 // 4, 100 * 1024 * 1024))


def _pick_tile(full, preferred, align=8):
    """Largest divisor of `full` <= `preferred` that is `align`-aligned.
    Falls back to the full dimension (always a legal block size)."""
    if full <= preferred:
        return full
    t = preferred
    while t >= align:
        if full % t == 0 and t % align == 0:
            return t
        t //= 2
    return full


# ---------------------------------------------------------------------------
# Generic tiled linear (+bias):  (M, K) @ (K, N) + (1, N)
# ---------------------------------------------------------------------------
def _matmul_bias_kernel(x_ref, w_ref, b_ref, o_ref, acc_ref):
    @pl.when(pl.program_id(2) == 0)
    def _init():
        acc_ref[...] = jnp.zeros_like(acc_ref)

    acc_ref[...] += jnp.dot(x_ref[...], w_ref[...],
                            preferred_element_type=jnp.float32)

    @pl.when(pl.program_id(2) == pl.num_programs(2) - 1)
    def _finalize():
        o_ref[...] = (acc_ref[...] + b_ref[...]).astype(o_ref.dtype)


def pallas_linear(x2d, w, bias=None, *, tm=512, tn=512, tk=1024,
                  out_dtype=None, vmem_limit=None, sublane=8):
    """x2d: (M, K); w: (K, N); bias: optional (N,). Returns (M, N)."""
    M, K = x2d.shape
    K2, N = w.shape
    assert K == K2
    out_dtype = out_dtype or x2d.dtype
    vmem_limit = vmem_limit or _vmem_budget_bytes()
    if bias is None:
        bias = jnp.zeros((N,), jnp.float32)
    b2d = bias.astype(jnp.float32).reshape(1, N)

    tm = _pick_tile(M, tm, align=sublane)
    tn = _pick_tile(N, tn, align=128)
    tk = _pick_tile(K, tk, align=128)
    grid = (M // tm, N // tn, K // tk)

    cost = pl.CostEstimate(
        flops=int(2 * M * N * K),
        transcendentals=0,
        bytes_accessed=int(M * K * x2d.dtype.itemsize * (N // tn)
                           + K * N * w.dtype.itemsize * (M // tm)
                           + M * N * jnp.dtype(out_dtype).itemsize),
    )
    return pl.pallas_call(
        _matmul_bias_kernel,
        out_shape=jax.ShapeDtypeStruct((M, N), out_dtype),
        grid=grid,
        in_specs=[
            pl.BlockSpec((tm, tk), lambda i, j, k: (i, k)),
            pl.BlockSpec((tk, tn), lambda i, j, k: (k, j)),
            pl.BlockSpec((1, tn), lambda i, j, k: (0, j)),
        ],
        out_specs=pl.BlockSpec((tm, tn), lambda i, j, k: (i, j)),
        scratch_shapes=[pltpu.VMEM((tm, tn), jnp.float32)],
        compiler_params=pltpu.CompilerParams(
            dimension_semantics=("parallel", "parallel", "arbitrary"),
            vmem_limit_bytes=vmem_limit),
        cost_estimate=cost,
    )(x2d, w, b2d)


# ---------------------------------------------------------------------------
# Fused QKV projection that writes its output directly as (3, b, h, n, d).
# The token-major (tm, tn) accumulator is re-sliced into per-(component, head)
# (tm, d) chunks in VMEM at finalize time -> no XLA HBM relayout afterwards.
# ---------------------------------------------------------------------------
def _qkv_proj_kernel(x_ref, w_ref, o_ref, acc_ref, *, n_comp, n_hblk, d):
    @pl.when(pl.program_id(3) == 0)
    def _init():
        acc_ref[...] = jnp.zeros_like(acc_ref)

    acc_ref[...] += jnp.dot(x_ref[0], w_ref[...],
                            preferred_element_type=jnp.float32)

    @pl.when(pl.program_id(3) == pl.num_programs(3) - 1)
    def _finalize():
        acc = acc_ref[...]
        for c in range(n_comp):
            for g in range(n_hblk):
                col = (c * n_hblk + g) * d
                o_ref[c, 0, g, :, :] = acc[:, col:col + d].astype(o_ref.dtype)


def _choose_qkv_tn(h, d, max_tn=1024):
    total = 3 * h * d
    if total <= max_tn:
        return total
    hd = h * d
    for g in range(h, 0, -1):
        tn = g * d
        if tn <= max_tn and hd % tn == 0 and tn % 128 == 0:
            return tn
    return None


def pallas_qkv_projection(x, w_qkv, heads, dim_head, *,
                          tm=256, tk=1024, vmem_limit=None, sublane=8):
    """x: (b, n, K); w_qkv: (K, 3*h*d) with column order (component, head, d).
    Returns qkv of shape (3, b, h, n, d)."""
    b, n, K = x.shape
    h, d = heads, dim_head
    N = 3 * h * d
    assert w_qkv.shape == (K, N)
    vmem_limit = vmem_limit or _vmem_budget_bytes()

    tn = _choose_qkv_tn(h, d)
    if tn is None:
        # TODO(synk): no lane-aligned head tiling exists for this (h, d); fall back
        # to a plain matmul + XLA relayout.
        qkv = pallas_linear(x.reshape(b * n, K), w_qkv,
                            vmem_limit=vmem_limit, sublane=sublane)
        return qkv.reshape(b, n, 3, h, d).transpose(2, 0, 3, 1, 4)

    tm = _pick_tile(n, tm, align=sublane)
    tk = _pick_tile(K, tk, align=128)

    if tn == N:
        # one column block spanning all 3 components and all heads
        n_comp, n_hblk, col_blocks = 3, h, 1
        out_spec = pl.BlockSpec((3, 1, h, tm, d),
                                lambda bi, ni, j, k: (0, bi, 0, ni, 0))
    else:
        # column blocks of `g` heads, always inside one component
        g = tn // d
        n_comp, n_hblk, col_blocks = 1, g, N // tn
        hblk_per_comp = (h * d) // tn
        out_spec = pl.BlockSpec(
            (1, 1, g, tm, d),
            lambda bi, ni, j, k: (j // hblk_per_comp, bi, j % hblk_per_comp, ni, 0))

    grid = (b, n // tm, col_blocks, K // tk)
    cost = pl.CostEstimate(
        flops=int(2 * b * n * K * N),
        transcendentals=0,
        bytes_accessed=int(b * n * K * x.dtype.itemsize * col_blocks
                           + K * N * w_qkv.dtype.itemsize * b * (n // tm)
                           + b * n * N * x.dtype.itemsize),
    )
    return pl.pallas_call(
        functools.partial(_qkv_proj_kernel, n_comp=n_comp, n_hblk=n_hblk, d=d),
        out_shape=jax.ShapeDtypeStruct((3, b, h, n, d), x.dtype),
        grid=grid,
        in_specs=[
            pl.BlockSpec((1, tm, tk), lambda bi, ni, j, k: (bi, ni, k)),
            pl.BlockSpec((tk, tn), lambda bi, ni, j, k: (k, j)),
        ],
        out_specs=out_spec,
        scratch_shapes=[pltpu.VMEM((tm, tn), jnp.float32)],
        compiler_params=pltpu.CompilerParams(
            dimension_semantics=("parallel", "parallel", "parallel", "arbitrary"),
            vmem_limit_bytes=vmem_limit),
        cost_estimate=cost,
    )(x, w_qkv)


# ---------------------------------------------------------------------------
# Attention kernels.  Inputs come straight from the (3, b, h, n, d) qkv array
# (component index is baked into each index_map).  Output is written
# lane-dense as (b, n, h*d): per-head (tq, d) results are concatenated along
# lanes inside the kernel (cheap VMEM work) so no HBM relayout is needed.
# Softmax scale is folded into w_q, so no per-step q scaling.
# ---------------------------------------------------------------------------
def _attn_resident_kernel(q_ref, k_ref, v_ref, o_ref, *, hb):
    """Single-pass softmax; full K/V for the head group resident across qi."""
    outs = []
    for hh in range(hb):
        q = q_ref[0, 0, hh, :, :]                    # (tq, d)
        k = k_ref[0, 0, hh, :, :]                    # (n, d)
        v = v_ref[0, 0, hh, :, :]
        s = lax.dot_general(q, k, (((1,), (1,)), ((), ())),
                            preferred_element_type=jnp.float32)   # (tq, n)
        m = jnp.max(s, axis=-1, keepdims=True)
        e = jnp.exp(s - m)
        inv = pl.reciprocal(jnp.sum(e, axis=-1, keepdims=True), approx=True)
        p = (e * inv).astype(v.dtype)
        outs.append(jnp.dot(p, v, preferred_element_type=jnp.float32))
    o_ref[0, :, :] = jnp.concatenate(outs, axis=-1).astype(o_ref.dtype)


def _attn_intermediates_kernel(q_ref, k_ref, v_ref, o_ref, pre_ref, post_ref, *, hb):
    outs = []
    for hh in range(hb):
        q = q_ref[0, 0, hh, :, :]
        k = k_ref[0, 0, hh, :, :]
        v = v_ref[0, 0, hh, :, :]
        s = lax.dot_general(q, k, (((1,), (1,)), ((), ())),
                            preferred_element_type=jnp.float32)
        pre_ref[0, hh, :, :] = s.astype(pre_ref.dtype)
        m = jnp.max(s, axis=-1, keepdims=True)
        e = jnp.exp(s - m)
        attn = e / jnp.sum(e, axis=-1, keepdims=True)   # exact divide: returned
        post_ref[0, hh, :, :] = attn.astype(post_ref.dtype)
        outs.append(jnp.dot(attn.astype(v.dtype), v,
                            preferred_element_type=jnp.float32))
    o_ref[0, :, :] = jnp.concatenate(outs, axis=-1).astype(o_ref.dtype)


def _attn_flash_kernel(q_ref, k_ref, v_ref, o_ref, m_sc, l_sc, acc_sc, *, hb):
    ki = pl.program_id(3)

    @pl.when(ki == 0)
    def _init():
        m_sc[...] = jnp.full_like(m_sc, -jnp.inf)
        l_sc[...] = jnp.zeros_like(l_sc)
        acc_sc[...] = jnp.zeros_like(acc_sc)

    for hh in range(hb):
        q = q_ref[0, 0, hh, :, :]                    # (tq, d)
        k = k_ref[0, 0, hh, :, :]                    # (tkv, d)
        v = v_ref[0, 0, hh, :, :]
        s = lax.dot_general(q, k, (((1,), (1,)), ((), ())),
                            preferred_element_type=jnp.float32)   # (tq, tkv)
        m_prev = m_sc[hh, :, :]
        m_new = jnp.maximum(m_prev, jnp.max(s, axis=-1, keepdims=True))
        alpha = jnp.exp(m_prev - m_new)
        p = jnp.exp(s - m_new)
        l_sc[hh, :, :] = alpha * l_sc[hh, :, :] + jnp.sum(p, axis=-1, keepdims=True)
        acc_sc[hh, :, :] = alpha * acc_sc[hh, :, :] + jnp.dot(
            p.astype(v.dtype), v, preferred_element_type=jnp.float32)
        m_sc[hh, :, :] = m_new

    @pl.when(ki == pl.num_programs(3) - 1)
    def _finalize():
        outs = [acc_sc[hh, :, :] * pl.reciprocal(l_sc[hh, :, :], approx=True)
                for hh in range(hb)]
        o_ref[0, :, :] = jnp.concatenate(outs, axis=-1).astype(o_ref.dtype)


def pallas_attention_core(qkv, *, out_dtype=None, return_intermediates=True,
                          intermediates_dtype=jnp.float32, attn_impl=None,
                          tq=256, tkv=1024, vmem_limit=None, sublane=8):
    """qkv: (3, b, h, n, d) head-split activations (softmax scale already in q).
    Returns (out (b, n, h*d), intermediates or None)."""
    if attn_impl not in (None, "single", "flash"):
        raise ValueError(attn_impl)
    _, b, h, n, d = qkv.shape
    out_dtype = out_dtype or qkv.dtype
    vmem_limit = vmem_limit or _vmem_budget_bytes()
    budget = 0.85 * vmem_limit
    isz = qkv.dtype.itemsize
    osz = jnp.dtype(out_dtype).itemsize
    ppsz = jnp.dtype(intermediates_dtype).itemsize
    hd = h * d

    # head-group sizes whose output column block stays lane-legal
    hb_list = [g for g in (8, 4, 2, 1) if h % g == 0 and (g * d) % 128 == 0]
    if h not in hb_list:
        hb_list.append(h)                 # hb == h -> full-width (h*d) column block
    tq_list = sorted({t for t in (tq, 256, 128, 64, 32, 16, 8)
                      if t <= n and n % t == 0 and t % sublane == 0},
                     reverse=True) or [n]
    tkv_list = sorted({t for t in (tkv, 1024, 512, 256, 128, 64, 32, 16, 8)
                       if t <= n and n % t == 0 and t % sublane == 0},
                      reverse=True) or [n]

    def resident_bytes(hb_, tq_, with_pp):
        bts = (2 * hb_ * tq_ * d * isz            # q (double buffered)
               + 4 * hb_ * n * d * isz            # K + V (double buffered)
               + 2 * tq_ * hb_ * d * osz          # out block
               + 3 * tq_ * n * 4)                 # f32 temporaries (per head)
        if with_pp:
            bts += 4 * hb_ * tq_ * n * ppsz + tq_ * n * 4
        return int(bts * 1.15)

    def flash_bytes(hb_, tq_, tkv_):
        return int((2 * hb_ * tq_ * d * isz + 4 * hb_ * tkv_ * d * isz
                    + 2 * tq_ * hb_ * d * osz + hb_ * tq_ * (d + 2) * 4
                    + 3 * tq_ * tkv_ * 4) * 1.15)

    def pick_resident(with_pp):
        for hb_ in hb_list:
            for tq_ in tq_list:
                if resident_bytes(hb_, tq_, with_pp) <= budget:
                    return hb_, tq_
        return None

    def q_kv_specs_3d(hb_, tq_):
        q_spec = pl.BlockSpec((1, 1, hb_, tq_, d),
                              lambda bi, hi, qi: (0, bi, hi, qi, 0))
        k_spec = pl.BlockSpec((1, 1, hb_, n, d),
                              lambda bi, hi, qi: (1, bi, hi, 0, 0))
        v_spec = pl.BlockSpec((1, 1, hb_, n, d),
                              lambda bi, hi, qi: (2, bi, hi, 0, 0))
        o_spec = pl.BlockSpec((1, tq_, hb_ * d), lambda bi, hi, qi: (bi, qi, hi))
        return q_spec, k_spec, v_spec, o_spec

    # ---------------- intermediates path (pre / post softmax returned) -------
    if return_intermediates:
        pick = pick_resident(True) or (min(hb_list), min(tq_list))
        hb, tq_ = pick
        q_spec, k_spec, v_spec, o_spec = q_kv_specs_3d(hb, tq_)
        pp_spec = pl.BlockSpec((1, hb, tq_, n), lambda bi, hi, qi: (bi, hi, qi, 0))
        cost = pl.CostEstimate(
            flops=int(4 * b * h * n * n * d),
            transcendentals=int(b * h * n * n),
            bytes_accessed=int(3 * b * h * n * d * isz + b * n * hd * osz
                               + 2 * b * h * n * n * ppsz))
        out, pre, post = pl.pallas_call(
            functools.partial(_attn_intermediates_kernel, hb=hb),
            grid=(b, h // hb, n // tq_),
            in_specs=[q_spec, k_spec, v_spec],
            out_specs=[o_spec, pp_spec, pp_spec],
            out_shape=(jax.ShapeDtypeStruct((b, n, hd), out_dtype),
                       jax.ShapeDtypeStruct((b, h, n, n), intermediates_dtype),
                       jax.ShapeDtypeStruct((b, h, n, n), intermediates_dtype)),
            compiler_params=pltpu.CompilerParams(
                dimension_semantics=("parallel", "parallel", "parallel"),
                vmem_limit_bytes=vmem_limit),
            cost_estimate=cost,
        )(qkv, qkv, qkv)
        return out, (pre, post)

    # ---------------- no intermediates: single-pass if it fits, else flash ---
    impl = attn_impl
    if impl is None:
        impl = "single" if pick_resident(False) is not None else "flash"

    if impl == "single":
        pick = pick_resident(False) or (min(hb_list), min(tq_list))
        hb, tq_ = pick
        q_spec, k_spec, v_spec, o_spec = q_kv_specs_3d(hb, tq_)
        cost = pl.CostEstimate(
            flops=int(4 * b * h * n * n * d),
            transcendentals=int(b * h * n * n),
            bytes_accessed=int(3 * b * h * n * d * isz + b * n * hd * osz))
        out = pl.pallas_call(
            functools.partial(_attn_resident_kernel, hb=hb),
            grid=(b, h // hb, n // tq_),
            in_specs=[q_spec, k_spec, v_spec],
            out_specs=o_spec,
            out_shape=jax.ShapeDtypeStruct((b, n, hd), out_dtype),
            compiler_params=pltpu.CompilerParams(
                dimension_semantics=("parallel", "parallel", "parallel"),
                vmem_limit_bytes=vmem_limit),
            cost_estimate=cost,
        )(qkv, qkv, qkv)
        return out, None

    # flash / online-softmax (tiled over the KV axis)
    choice = None
    for hb_c in hb_list:
        for tq_c in tq_list:
            for tkv_c in tkv_list:
                if flash_bytes(hb_c, tq_c, tkv_c) <= budget:
                    choice = (hb_c, tq_c, tkv_c)
                    break
            if choice is not None:
                break
        if choice is not None:
            break
    if choice is None:
        choice = (min(hb_list), min(tq_list), min(tkv_list))
    hb, tq_, tkv_ = choice
    nq = n // tq_
    q_spec = pl.BlockSpec((1, 1, hb, tq_, d),
                          lambda bi, hi, qi, ki: (0, bi, hi, qi, 0))
    k_spec = pl.BlockSpec((1, 1, hb, tkv_, d),
                          lambda bi, hi, qi, ki: (1, bi, hi, ki, 0))
    v_spec = pl.BlockSpec((1, 1, hb, tkv_, d),
                          lambda bi, hi, qi, ki: (2, bi, hi, ki, 0))
    o_spec = pl.BlockSpec((1, tq_, hb * d), lambda bi, hi, qi, ki: (bi, qi, hi))
    cost = pl.CostEstimate(
        flops=int(4 * b * h * n * n * d),
        transcendentals=int(b * h * n * n),
        bytes_accessed=int(b * h * n * d * isz * (1 + 2 * nq)   # K/V re-read per q block
                           + b * n * hd * osz))
    out = pl.pallas_call(
        functools.partial(_attn_flash_kernel, hb=hb),
        grid=(b, h // hb, nq, n // tkv_),
        in_specs=[q_spec, k_spec, v_spec],
        out_specs=o_spec,
        out_shape=jax.ShapeDtypeStruct((b, n, hd), out_dtype),
        scratch_shapes=[pltpu.VMEM((hb, tq_, 1), jnp.float32),
                        pltpu.VMEM((hb, tq_, 1), jnp.float32),
                        pltpu.VMEM((hb, tq_, d), jnp.float32)],
        compiler_params=pltpu.CompilerParams(
            dimension_semantics=("parallel", "parallel", "parallel", "arbitrary"),
            vmem_limit_bytes=vmem_limit),
        cost_estimate=cost,
    )(qkv, qkv, qkv)
    return out, None


# ---------------------------------------------------------------------------
# Attention module (forward only)
# ---------------------------------------------------------------------------
class AttentionPallas:
    def __init__(self, dim, dim_head=64, heads=8, key=None,
                 compute_dtype=None, intermediates_dtype=jnp.float32):
        self.dim = dim
        self.dim_head = dim_head
        self.heads = heads
        self.scale = dim_head ** (-0.5)
        self.compute_dtype = compute_dtype            # e.g. jnp.bfloat16
        self.intermediates_dtype = intermediates_dtype
        qk_dim = v_dim = dim_head * heads

        key = key if key is not None else jax.random.PRNGKey(0)
        kq, kk, kv, kow, kob = jax.random.split(key, 5)

        def init_linear(k, fan_in, fan_out):
            bound = 1.0 / (fan_in ** 0.5)
            # stored already transposed: (fan_in, fan_out), so y = x @ W
            return jax.random.uniform(k, (fan_in, fan_out), jnp.float32,
                                      minval=-bound, maxval=bound)

        self.w_q = init_linear(kq, dim, qk_dim)
        self.w_k = init_linear(kk, dim, qk_dim)
        self.w_v = init_linear(kv, dim, v_dim)
        # fused projection weight; softmax scale folded into the q columns
        # (one-time transform, zero runtime cost, bit-exact for power-of-two d)
        self.w_qkv = jnp.concatenate(
            [self.w_q * self.scale, self.w_k, self.w_v], axis=1)
        self.w_out = init_linear(kow, v_dim, dim)
        bound_o = 1.0 / (v_dim ** 0.5)
        self.b_out = jax.random.uniform(kob, (dim,), jnp.float32,
                                        minval=-bound_o, maxval=bound_o)

    def __call__(self, x, mask=None, rotary_pos_emb=None,
                 return_intermediates=True, attn_impl=None):
        # TODO(synk): mask / rotary_pos_emb / dropout branches not implemented
        # (default inference path only).
        assert mask is None and rotary_pos_emb is None
        b, n, dim = x.shape
        h, d = self.heads, self.dim_head
        cdt = self.compute_dtype
        sublane = 16 if cdt == jnp.bfloat16 else 8
        vmem_limit = _vmem_budget_bytes()

        xq = x if cdt is None else x.astype(cdt)
        w_qkv = self.w_qkv if cdt is None else self.w_qkv.astype(cdt)
        w_out = self.w_out if cdt is None else self.w_out.astype(cdt)

        # fused q/k/v projection, output already head-split (no HBM relayout)
        qkv = pallas_qkv_projection(xq, w_qkv, h, d,
                                    vmem_limit=vmem_limit, sublane=sublane)
        k_cache, v_cache = qkv[1], qkv[2]

        out_bnd, intermediates = pallas_attention_core(
            qkv,
            return_intermediates=return_intermediates,
            intermediates_dtype=self.intermediates_dtype,
            attn_impl=attn_impl,
            vmem_limit=vmem_limit, sublane=sublane)

        # attention output is already lane-dense (b, n, h*d): free reshape
        out2d = out_bnd.reshape(b * n, h * d)
        final = pallas_linear(out2d, w_out, self.b_out, out_dtype=x.dtype,
                              vmem_limit=vmem_limit, sublane=sublane
                              ).reshape(b, n, dim)
        return final, intermediates, k_cache, v_cache


# ---------------------------------------------------------------------------
# Reference (pure JAX) for sanity
# ---------------------------------------------------------------------------
def reference_forward(attn, x):
    b, n, dim = x.shape
    h, d = attn.heads, attn.dim_head
    q = x @ attn.w_q
    k = x @ attn.w_k
    v = x @ attn.w_v
    split = lambda t: t.reshape(b, n, h, d).transpose(0, 2, 1, 3)
    q, k, v = map(split, (q, k, v))
    dots = jnp.einsum("bhid,bhjd->bhij", q, k) * attn.scale
    a = jax.nn.softmax(dots, axis=-1)
    out = jnp.einsum("bhij,bhjd->bhid", a, v)
    out = out.transpose(0, 2, 1, 3).reshape(b, n, h * d)
    return out @ attn.w_out + attn.b_out, dots, a, k, v


if __name__ == "__main__":
    key = jax.random.PRNGKey(0)
    kx, kp = jax.random.split(key)

    # Small shapes consistent with the module: batch=2, seq=8, dim=32, heads=4, dim_head=16
    b, n, dim, heads, dim_head = 2, 8, 32, 4, 16
    x = jax.random.normal(kx, (b, n, dim), jnp.float32)

    module = AttentionPallas(dim=dim, dim_head=dim_head, heads=heads, key=kp)

    # full module path (pre/post-softmax intermediates, like the torch module)
    out, (pre, post), k_cache, v_cache = module(x)
    jax.block_until_ready((out, pre, post, k_cache, v_cache))

    # inference paths: single-pass (auto) and flash/online-softmax (forced)
    out_single, _, _, _ = module(x, return_intermediates=False)
    out_flash, _, _, _ = module(x, return_intermediates=False, attn_impl="flash")
    jax.block_until_ready((out_single, out_flash))

    ref_out, ref_pre, ref_post, ref_k, ref_v = reference_forward(module, x)
    assert jnp.allclose(pre, ref_pre, atol=1e-4, rtol=1e-4)
    assert jnp.allclose(post, ref_post, atol=1e-4, rtol=1e-4)
    assert jnp.allclose(out, ref_out, atol=2e-3, rtol=2e-3)
    assert jnp.allclose(out_single, ref_out, atol=2e-3, rtol=2e-3)
    assert jnp.allclose(out_flash, ref_out, atol=2e-3, rtol=2e-3)
    assert jnp.allclose(k_cache, ref_k, atol=1e-4, rtol=1e-4)
    assert jnp.allclose(v_cache, ref_v, atol=1e-4, rtol=1e-4)

    print("KERNEL_OK")
</pallas_src>

<mosaic_0001>
module attributes {stable_mosaic.version = 11 : i64} {
  func.func @_qkv_proj_kernel(%arg0: i32, %arg1: i32, %arg2: i32, %arg3: i32, %arg4: memref<1x8x32xf32, #tpu.memory_space<vmem>>, %arg5: memref<32x192xf32, #tpu.memory_space<vmem>>, %arg6: memref<3x1x4x8x16xf32, #tpu.memory_space<vmem>>, %arg7: memref<8x192xf32, #tpu.memory_space<vmem>>) attributes {dimension_semantics = [#tpu.dimension_semantics<parallel>, #tpu.dimension_semantics<parallel>, #tpu.dimension_semantics<parallel>, #tpu.dimension_semantics<arbitrary>], iteration_bounds = array<i64: 2, 1, 1, 1>, scalar_prefetch = 0 : i64, scratch_operands = 1 : i64, tpu.core_type = #tpu.core_type<tc>, window_params = [{transform_indices = @transform_0, window_bounds = array<i64: 1, 8, 32>}, {transform_indices = @transform_1, window_bounds = array<i64: 32, 192>}, {transform_indices = @transform_2, window_bounds = array<i64: 3, 1, 4, 8, 16>}]} {
    %c0_i32 = arith.constant 0 : i32
    %0 = arith.cmpi eq, %arg3, %c0_i32 : i32
    %1 = arith.extui %0 : i1 to i32
    %c0_i32_0 = arith.constant 0 : i32
    %2 = arith.cmpi ne, %1, %c0_i32_0 : i32
    scf.if %2 {
      %cst_11 = arith.constant 0.000000e+00 : f32
      %13 = vector.broadcast %cst_11 : f32 to vector<8x192xf32>
      %c0_12 = arith.constant 0 : index
      %c0_13 = arith.constant 0 : index
      %14 = vector.load %arg7[%c0_12, %c0_13] : memref<8x192xf32, #tpu.memory_space<vmem>>, vector<8x192xf32>
      tpu.vector_store %arg7[%c0_12, %c0_13], %13 {strides = array<i32>} : memref<8x192xf32, #tpu.memory_space<vmem>>, vector<8x192xf32>,
    } else {
    }
    %c0 = arith.constant 0 : index
    %c0_1 = arith.constant 0 : index
    %3 = vector.load %arg7[%c0, %c0_1] : memref<8x192xf32, #tpu.memory_space<vmem>>, vector<8x192xf32>
    %c0_2 = arith.constant 0 : index
    %c0_3 = arith.constant 0 : index
    %c0_4 = arith.constant 0 : index
    %4 = vector.load %arg4[%c0_2, %c0_3, %c0_4] : memref<1x8x32xf32, #tpu.memory_space<vmem>>, vector<1x8x32xf32>
    %5 = vector.shape_cast %4 : vector<1x8x32xf32> to vector<8x32xf32>
    %c0_5 = arith.constant 0 : index
    %c0_6 = arith.constant 0 : index
    %6 = vector.load %arg5[%c0_5, %c0_6] : memref<32x192xf32, #tpu.memory_space<vmem>>, vector<32x192xf32>
    %cst = arith.constant dense<0.000000e+00> : vector<8x192xf32>
    %7 = tpu.matmul %5, %6, %cst {dimension_numbers = #tpu.dot_dimension_numbers<[1], [0], [0], [1], [0, 0, 1, 1], [], []>} : vector<8x32xf32>, vector<32x192xf32>, vector<8x192xf32> -> vector<8x192xf32>
    %8 = arith.addf %3, %7 : vector<8x192xf32>
    %c0_7 = arith.constant 0 : index
    %c0_8 = arith.constant 0 : index
    %9 = vector.load %arg7[%c0_7, %c0_8] : memref<8x192xf32, #tpu.memory_space<vmem>>, vector<8x192xf32>
    tpu.vector_store %arg7[%c0_7, %c0_8], %8 {strides = array<i32>} : memref<8x192xf32, #tpu.memory_space<vmem>>, vector<8x192xf32>,
    %c0_i32_9 = arith.constant 0 : i32
    %10 = arith.cmpi eq, %arg3, %c0_i32_9 : i32
    %11 = arith.extui %10 : i1 to i32
    %c0_i32_10 = arith.constant 0 : i32
    %12 = arith.cmpi ne, %11, %c0_i32_10 : i32
    scf.if %12 {
      %c0_11 = arith.constant 0 : index
      %c0_12 = arith.constant 0 : index
      %13 = vector.load %arg7[%c0_11, %c0_12] : memref<8x192xf32, #tpu.memory_space<vmem>>, vector<8x192xf32>
      %14 = vector.extract_strided_slice %13 {offsets = [0, 0], sizes = [8, 16], strides = [1, 1]} : vector<8x192xf32> to vector<8x16xf32>
      %c0_13 = arith.constant 0 : index
      %c0_14 = arith.constant 0 : index
      %c0_15 = arith.constant 0 : index
      %c0_16 = arith.constant 0 : index
      %c0_17 = arith.constant 0 : index
      %15 = vector.load %arg6[%c0_13, %c0_14, %c0_15, %c0_16, %c0_17] : memref<3x1x4x8x16xf32, #tpu.memory_space<vmem>>, vector<1x1x1x8x16xf32>
      %16 = vector.shape_cast %15 : vector<1x1x1x8x16xf32> to vector<8x16xf32>
      %17 = vector.shape_cast %14 : vector<8x16xf32> to vector<1x1x1x8x16xf32>
      tpu.vector_store %arg6[%c0_13, %c0_14, %c0_15, %c0_16, %c0_17], %17 {strides = array<i32>} : memref<3x1x4x8x16xf32, #tpu.memory_space<vmem>>, vector<1x1x1x8x16xf32>,
      %18 = vector.extract_strided_slice %13 {offsets = [0, 16], sizes = [8, 16], strides = [1, 1]} : vector<8x192xf32> to vector<8x16xf32>
      %c0_18 = arith.constant 0 : index
      %c0_19 = arith.constant 0 : index
      %c1 = arith.constant 1 : index
      %c0_20 = arith.constant 0 : index
      %c0_21 = arith.constant 0 : index
      %19 = vector.load %arg6[%c0_18, %c0_19, %c1, %c0_20, %c0_21] : memref<3x1x4x8x16xf32, #tpu.memory_space<vmem>>, vector<1x1x1x8x16xf32>
      %20 = vector.shape_cast %19 : vector<1x1x1x8x16xf32> to vector<8x16xf32>
      %21 = vector.shape_cast %18 : vector<8x16xf32> to vector<1x1x1x8x16xf32>
      tpu.vector_store %arg6[%c0_18, %c0_19, %c1, %c0_20, %c0_21], %21 {strides = array<i32>} : memref<3x1x4x8x16xf32, #tpu.memory_space<vmem>>, vector<1x1x1x8x16xf32>,
      %22 = vector.extract_strided_slice %13 {offsets = [0, 32], sizes = [8, 16], strides = [1, 1]} : vector<8x192xf32> to vector<8x16xf32>
      %c0_22 = arith.constant 0 : index
      %c0_23 = arith.constant 0 : index
      %c2 = arith.constant 2 : index
      %c0_24 = arith.constant 0 : index
      %c0_25 = arith.constant 0 : index
      %23 = vector.load %arg6[%c0_22, %c0_23, %c2, %c0_24, %c0_25] : memref<3x1x4x8x16xf32, #tpu.memory_space<vmem>>, vector<1x1x1x8x16xf32>
      %24 = vector.shape_cast %23 : vector<1x1x1x8x16xf32> to vector<8x16xf32>
      %25 = vector.shape_cast %22 : vector<8x16xf32> to vector<1x1x1x8x16xf32>
      tpu.vector_store %arg6[%c0_22, %c0_23, %c2, %c0_24, %c0_25], %25 {strides = array<i32>} : memref<3x1x4x8x16xf32, #tpu.memory_space<vmem>>, vector<1x1x1x8x16xf32>,
      %26 = vector.extract_strided_slice %13 {offsets = [0, 48], sizes = [8, 16], strides = [1, 1]} : vector<8x192xf32> to vector<8x16xf32>
      %c0_26 = arith.constant 0 : index
      %c0_27 = arith.constant 0 : index
      %c3 = arith.constant 3 : index
      %c0_28 = arith.constant 0 : index
      %c0_29 = arith.constant 0 : index
      %27 = vector.load %arg6[%c0_26, %c0_27, %c3, %c0_28, %c0_29] : memref<3x1x4x8x16xf32, #tpu.memory_space<vmem>>, vector<1x1x1x8x16xf32>
      %28 = vector.shape_cast %27 : vector<1x1x1x8x16xf32> to vector<8x16xf32>
      %29 = vector.shape_cast %26 : vector<8x16xf32> to vector<1x1x1x8x16xf32>
      tpu.vector_store %arg6[%c0_26, %c0_27, %c3, %c0_28, %c0_29], %29 {strides = array<i32>} : memref<3x1x4x8x16xf32, #tpu.memory_space<vmem>>, vector<1x1x1x8x16xf32>,
      %30 = vector.extract_strided_slice %13 {offsets = [0, 64], sizes = [8, 16], strides = [1, 1]} : vector<8x192xf32> to vector<8x16xf32>
      %c1_30 = arith.constant 1 : index
      %c0_31 = arith.constant 0 : index
      %c0_32 = arith.constant 0 : index
      %c0_33 = arith.constant 0 : index
      %c0_34 = arith.constant 0 : index
      %31 = vector.load %arg6[%c1_30, %c0_31, %c0_32, %c0_33, %c0_34] : memref<3x1x4x8x16xf32, #tpu.memory_space<vmem>>, vector<1x1x1x8x16xf32>
      %32 = vector.shape_cast %31 : vector<1x1x1x8x16xf32> to vector<8x16xf32>
      %33 = vector.shape_cast %30 : vector<8x16xf32> to vector<1x1x1x8x16xf32>
      tpu.vector_store %arg6[%c1_30, %c0_31, %c0_32, %c0_33, %c0_34], %33 {strides = array<i32>} : memref<3x1x4x8x16xf32, #tpu.memory_space<vmem>>, vector<1x1x1x8x16xf32>,
      %34 = vector.extract_strided_slice %13 {offsets = [0, 80], sizes = [8, 16], strides = [1, 1]} : vector<8x192xf32> to vector<8x16xf32>
      %c1_35 = arith.constant 1 : index
      %c0_36 = arith.constant 0 : index
      %c1_37 = arith.constant 1 : index
      %c0_38 = arith.constant 0 : index
      %c0_39 = arith.constant 0 : index
      %35 = vector.load %arg6[%c1_35, %c0_36, %c1_37, %c0_38, %c0_39] : memref<3x1x4x8x16xf32, #tpu.memory_space<vmem>>, vector<1x1x1x8x16xf32>
      %36 = vector.shape_cast %35 : vector<1x1x1x8x16xf32> to vector<8x16xf32>
      %37 = vector.shape_cast %34 : vector<8x16xf32> to vector<1x1x1x8x16xf32>
      tpu.vector_store %arg6[%c1_35, %c0_36, %c1_37, %c0_38, %c0_39], %37 {strides = array<i32>} : memref<3x1x4x8x16xf32, #tpu.memory_space<vmem>>, vector<1x1x1x8x16xf32>,
      %38 = vector.extract_strided_slice %13 {offsets = [0, 96], sizes = [8, 16], strides = [1, 1]} : vector<8x192xf32> to vector<8x16xf32>
      %c1_40 = arith.constant 1 : index
      %c0_41 = arith.constant 0 : index
      %c2_42 = arith.constant 2 : index
      %c0_43 = arith.constant 0 : index
      %c0_44 = arith.constant 0 : index
      %39 = vector.load %arg6[%c1_40, %c0_41, %c2_42, %c0_43, %c0_44] : memref<3x1x4x8x16xf32, #tpu.memory_space<vmem>>, vector<1x1x1x8x16xf32>
      %40 = vector.shape_cast %39 : vector<1x1x1x8x16xf32> to vector<8x16xf32>
      %41 = vector.shape_cast %38 : vector<8x16xf32> to vector<1x1x1x8x16xf32>
      tpu.vector_store %arg6[%c1_40, %c0_41, %c2_42, %c0_43, %c0_44], %41 {strides = array<i32>} : memref<3x1x4x8x16xf32, #tpu.memory_space<vmem>>, vector<1x1x1x8x16xf32>,
      %42 = vector.extract_strided_slice %13 {offsets = [0, 112], sizes = [8, 16], strides = [1, 1]} : vector<8x192xf32> to vector<8x16xf32>
      %c1_45 = arith.constant 1 : index
      %c0_46 = arith.constant 0 : index
      %c3_47 = arith.constant 3 : index
      %c0_48 = arith.constant 0 : index
      %c0_49 = arith.constant 0 : index
      %43 = vector.load %arg6[%c1_45, %c0_46, %c3_47, %c0_48, %c0_49] : memref<3x1x4x8x16xf32, #tpu.memory_space<vmem>>, vector<1x1x1x8x16xf32>
      %44 = vector.shape_cast %43 : vector<1x1x1x8x16xf32> to vector<8x16xf32>
      %45 = vector.shape_cast %42 : vector<8x16xf32> to vector<1x1x1x8x16xf32>
      tpu.vector_store %arg6[%c1_45, %c0_46, %c3_47, %c0_48, %c0_49], %45 {strides = array<i32>} : memref<3x1x4x8x16xf32, #tpu.memory_space<vmem>>, vector<1x1x1x8x16xf32>,
      %46 = vector.extract_strided_slice %13 {offsets = [0, 128], sizes = [8, 16], strides = [1, 1]} : vector<8x192xf32> to vector<8x16xf32>
      %c2_50 = arith.constant 2 : index
      %c0_51 = arith.constant 0 : index
      %c0_52 = arith.constant 0 : index
      %c0_53 = arith.constant 0 : index
      %c0_54 = arith.constant 0 : index
      %47 = vector.load %arg6[%c2_50, %c0_51, %c0_52, %c0_53, %c0_54] : memref<3x1x4x8x16xf32, #tpu.memory_space<vmem>>, vector<1x1x1x8x16xf32>
      %48 = vector.shape_cast %47 : vector<1x1x1x8x16xf32> to vector<8x16xf32>
      %49 = vector.shape_cast %46 : vector<8x16xf32> to vector<1x1x1x8x16xf32>
      tpu.vector_store %arg6[%c2_50, %c0_51, %c0_52, %c0_53, %c0_54], %49 {strides = array<i32>} : memref<3x1x4x8x16xf32, #tpu.memory_space<vmem>>, vector<1x1x1x8x16xf32>,
      %50 = vector.extract_strided_slice %13 {offsets = [0, 144], sizes = [8, 16], strides = [1, 1]} : vector<8x192xf32> to vector<8x16xf32>
      %c2_55 = arith.constant 2 : index
      %c0_56 = arith.constant 0 : index
      %c1_57 = arith.constant 1 : index
      %c0_58 = arith.constant 0 : index
      %c0_59 = arith.constant 0 : index
      %51 = vector.load %arg6[%c2_55, %c0_56, %c1_57, %c0_58, %c0_59] : memref<3x1x4x8x16xf32, #tpu.memory_space<vmem>>, vector<1x1x1x8x16xf32>
      %52 = vector.shape_cast %51 : vector<1x1x1x8x16xf32> to vector<8x16xf32>
      %53 = vector.shape_cast %50 : vector<8x16xf32> to vector<1x1x1x8x16xf32>
      tpu.vector_store %arg6[%c2_55, %c0_56, %c1_57, %c0_58, %c0_59], %53 {strides = array<i32>} : memref<3x1x4x8x16xf32, #tpu.memory_space<vmem>>, vector<1x1x1x8x16xf32>,
      %54 = vector.extract_strided_slice %13 {offsets = [0, 160], sizes = [8, 16], strides = [1, 1]} : vector<8x192xf32> to vector<8x16xf32>
      %c2_60 = arith.constant 2 : index
      %c0_61 = arith.constant 0 : index
      %c2_62 = arith.constant 2 : index
      %c0_63 = arith.constant 0 : index
      %c0_64 = arith.constant 0 : index
      %55 = vector.load %arg6[%c2_60, %c0_61, %c2_62, %c0_63, %c0_64] : memref<3x1x4x8x16xf32, #tpu.memory_space<vmem>>, vector<1x1x1x8x16xf32>
      %56 = vector.shape_cast %55 : vector<1x1x1x8x16xf32> to vector<8x16xf32>
      %57 = vector.shape_cast %54 : vector<8x16xf32> to vector<1x1x1x8x16xf32>
      tpu.vector_store %arg6[%c2_60, %c0_61, %c2_62, %c0_63, %c0_64], %57 {strides = array<i32>} : memref<3x1x4x8x16xf32, #tpu.memory_space<vmem>>, vector<1x1x1x8x16xf32>,
      %58 = vector.extract_strided_slice %13 {offsets = [0, 176], sizes = [8, 16], strides = [1, 1]} : vector<8x192xf32> to vector<8x16xf32>
      %c2_65 = arith.constant 2 : index
      %c0_66 = arith.constant 0 : index
      %c3_67 = arith.constant 3 : index
      %c0_68 = arith.constant 0 : index
      %c0_69 = arith.constant 0 : index
      %59 = vector.load %arg6[%c2_65, %c0_66, %c3_67, %c0_68, %c0_69] : memref<3x1x4x8x16xf32, #tpu.memory_space<vmem>>, vector<1x1x1x8x16xf32>
      %60 = vector.shape_cast %59 : vector<1x1x1x8x16xf32> to vector<8x16xf32>
      %61 = vector.shape_cast %58 : vector<8x16xf32> to vector<1x1x1x8x16xf32>
      tpu.vector_store %arg6[%c2_65, %c0_66, %c3_67, %c0_68, %c0_69], %61 {strides = array<i32>} : memref<3x1x4x8x16xf32, #tpu.memory_space<vmem>>, vector<1x1x1x8x16xf32>,
    } else {
    }
    return
  }
  func.func @transform_0(%arg0: i32, %arg1: i32, %arg2: i32, %arg3: i32) -> (i32, i32, i32) {
    %c0_i32 = arith.constant 0 : i32
    return %arg0, %arg1, %arg3 : i32, i32, i32
  }
  func.func @transform_1(%arg0: i32, %arg1: i32, %arg2: i32, %arg3: i32) -> (i32, i32) {
    %c0_i32 = arith.constant 0 : i32
    return %arg3, %arg2 : i32, i32
  }
  func.func @transform_2(%arg0: i32, %arg1: i32, %arg2: i32, %arg3: i32) -> (i32, i32, i32, i32, i32) {
    %c0_i32 = arith.constant 0 : i32
    %c0_i32_0 = arith.constant 0 : i32
    %c0_i32_1 = arith.constant 0 : i32
    %c0_i32_2 = arith.constant 0 : i32
    return %c0_i32, %arg0, %c0_i32_0, %arg1, %c0_i32_1 : i32, i32, i32, i32, i32
  }
}

</mosaic_0001>

<bundles_post_ra>
// kernel: tpu_custom_call.1
= control target key start
LH: loop header
LB: loop body
LE: loop exit
PB: predicated region body
PF: predicated region fallthrough
CT: control target
= control target key end

     0   :  { %7 = vsyncpa [#allocation4], 0  ;;  %s997_s0 = inlined_call_operand.hbm [shape: f32[2,8,32], index: 0, kind: input, shape index: {}]   ;;  %s998_s1 = inlined_call_operand.hbm [shape: f32[32,192], index: 1, kind: input, shape index: {}]   ;;  %s999_s2 = inlined_call_operand.hbm [shape: f32[3,2,4,8,16], index: 2, kind: output, shape index: {}]  }
   0x1   :  { %9 = vsyncpa [#allocation4 + $0x1], 0 }
   0x2   :  { %10 = vsyncpa [#allocation7], 0 }
   0x3   :  { %11 = vsyncpa [#allocation5], 0 }
   0x4   :  { %13 = vsyncpa [#allocation5 + $0x1], 0  ;;  %s798_s9 = smov 0   ;;  %s800_s10 = smov 0  }
   0x5   :  { %s802_s11 = smov 0   ;;  %s804_s12 = smov 0  }
   0x6   :  { %s806_s13 = smov 0   ;;  %s808_s14 = smov 0  }
   0x7 LB: > { %s526_s15 = sadd.s32 4294967295, %s762_s14   ;;  %s527_s16 = sadd.s32 4294967294, %s762_s14   ;;  %s762_s14 = sphi %s808_s14, %s19_s14   ;;  %s758_s13 = sphi %s806_s13, %s1017_s13   ;;  %s754_s12 = sphi %s804_s12, %s1016_s12   ;;  %s750_s11 = sphi %s802_s11, %s1015_s11   ;;  %s746_s10 = sphi %s800_s10, %s1014_s10   ;;  %s742_s9 = sphi %s798_s9, %s1013_s9  }
   0x8   : > { %p69_p0 = scmp.ne.s32.totalorder %s746_s10, %s742_s9  ;;  %p832_p1 = scmp.eq.s32.totalorder %s526_s15, 0 }
   0x9   : > { %p836_p2 = scmp.eq.s32.totalorder %s526_s15, 1  ;;  %p129_p3 = scmp.eq.s32.totalorder %s527_s16, 1 }
   0xa   : > { %p842_p4 = por %p832_p1, %p69_p0  ;;  %p528_p5 = scmp.ge.s32.totalorder %s762_s14, 1 }
   0xb   : > { %p847_p6 = por %p129_p3, %p69_p0  ;;  %p136_p7 = scmp.lt.s32.totalorder %s762_s14, 3 }
   0xc   : > { %s1003_s19 = scalar_select %p842_p4, 1, 0 }
   0xd   : > { %s1004_s20 = scalar_select %p847_p6, 1, 0 }
   0xe   : > { %p852_p8 = pnand %p528_p5, %p136_p7  ;;  %s764_s22 = smov [#allocation6]  }
   0xf   : > { %s154_s23 = sshll.u32 %s764_s22, 4  ;;  %s45_s25 = sadd.s32 1, %s758_s13  ;;  %s155_s23 = int_to_ptr.vmem [resolvable:$true] %s154_s23 }
  0x10   : > { %p568_p9 = pneg %p852_p8  ;;  %s661_s26 = scalar_lea.vmem %s155_s23, 1024 }
  0x11   : > { %p662_p13 = scmp.ne.s32.totalorder %s155_s23, %s661_s26  ;;  %p669_p5 = scmp.lt.s32.totalorder %s155_s23, %s155_s23 }
  0x12   : > { %p861_p11 = pnand %p568_p9, %p832_p1  ;;  %p670_p7 = scmp.lt.s32.totalorder %s661_s26, %s661_s26 }
  0x14   : > { %p652_p12 = pneg %p861_p11  ;;  %p671_p6 = por %p670_p7, %p669_p5 }
  0x16   : > { %p664_p0 = pnand %p662_p13, %p652_p12 }
  0x18   : > { %p665_p3 = pneg %p664_p0 }
  0x1a   : > { %p672_p4 = pnand %p671_p6, %p665_p3 }
  0x1c   : > { %675 = shalt.err (!%p672_p4)
}
  0x1d   : > { %s765_s27 = smov 256   ;;  %s766_s28 = smov 16  }
  0x1e   : > { %571 = dma.hbm_to_vmem [thread:$0]  (!%p861_p11), %s998_s1, 1024, %s155_s23, [#allocation7], %s765_s27, %s765_s27, %s766_s28  }
  0x1f   : > { %p47_p6 = scmp.ge.s32.totalorder %s45_s25, 2  ;;  %s56_s3 = sadd.s32 1, %s750_s11 }
  0x20   : > { %p63_p4 = scmp.ne.s32.totalorder %s750_s11, %s746_s10  ;;  %p64_p9 = scmp.eq.s32.totalorder %s762_s14, 0 }
  0x21   : > { %s1019_s25 = smov (%p47_p6, %s45_s25), 0  ;;  %p581_p0 = scmp.lt.s32.totalorder %s762_s14, 2 }
  0x22   : > { %p879_p12 = por %p64_p9, %p63_p4  ;;  %p885_p13 = por %p836_p2, %p63_p4 }
  0x23   : > { %s49_s6 = ssub.s32 %s758_s13, %s1019_s25  ;;  %s168_s7 = sand.u32 1, %s750_s11  }
  0x24   : > { %p54_p11 = scmp.eq.s32.totalorder %s49_s6, 0  ;;  %s531_s8 = sshll.u32 %s168_s7, 3 }
  0x25   : > { %s532_s16 = sshll.u32 %s758_s13, 7  ;;  %s172_s26 = scalar_lea.vmem [#allocation3], %s531_s8 }
  0x26   : > { %s894_s15 = scalar_select %p54_p11, %s750_s11, %s56_s3  }
  0x27   : > { %s179_s24 = scalar_lea.hbm %s997_s0, %s532_s16  ;;  %s181_s27 = sshll.u32 %s172_s26, 4  ;;  %s182_s27 = int_to_ptr.vmem [resolvable:$true] %s181_s27 }
  0x28   : > { %p902_p2 = pnand %p581_p0, %p879_p12  ;;  %s169_s28 = scalar_lea.sflag [#allocation4], %s168_s7 }
  0x29   : > { %s689_s29 = scalar_lea.vmem %s182_s27, 128  ;;  %s767_s30 = smov [#allocation3]  }
  0x2a   : > { %p678_p3 = pneg %p902_p2  ;;  %p690_p5 = scmp.ne.s32.totalorder %s182_s27, %s689_s29 }
  0x2b   : > { %s694_s3 = sshll.u32 %s767_s30, 4  ;;  %s695_s3 = int_to_ptr.vmem [resolvable:$false] %s694_s3 }
  0x2c   : > { %p692_p7 = pnand %p690_p5, %p678_p3  ;;  %s696_s6 = scalar_lea.vmem %s695_s3, 256 }
  0x2d   : > { %p697_p4 = scmp.lt.s32.totalorder %s182_s27, %s695_s3  ;;  %p698_p9 = scmp.lt.s32.totalorder %s696_s6, %s689_s29 }
  0x2e   : > { %p693_p6 = pneg %p692_p7 }
  0x2f   : > { %p699_p11 = por %p698_p9, %p697_p4 }
  0x31   : > { %p700_p10 = pnand %p699_p11, %p693_p6 }
  0x33   : > { %703 = shalt.err (!%p700_p10)
}
  0x34   : > { %575 = dma.hbm_to_vmem [thread:$0]  (!%p902_p2), %s179_s24, 128, %s182_s27, %s169_s28  }
  0x35   : > { %190 = sbr.rel (%p852_p8) target bundleno = 404 (0x194), region = 28  ;;  %s913_s4 = sand.u32 (!%p852_p8), 1, %s746_s10  }
  0x36   : > { %s534_s7 = sshll.u32 (!%p852_p8), %s913_s4, 3  ;;  %s193_s8 = scalar_lea.sflag (!%p852_p8), [#allocation4], %s913_s4 }
  0x37   : > { %s196_s16 = scalar_lea.vmem (!%p852_p8), [#allocation3], %s534_s7  ;;  %p1010_p12 = scmp.ne.s32.totalorder (!%p852_p8), %s1003_s19, 0 }
  0x3a   : > { %729 = dma.done.wait (%p1010_p12), %s193_s8, 128  }
  0x3b   : > { %731 = vsyncadd (%p1010_p12), %s193_s8, 4294967168 }
  0x3c   : > { %733 = dma.done.wait (%p832_p1), [#allocation7], 1024  }
  0x3d   : > { %735 = vsyncadd (%p832_p1), [#allocation7], 4294966272  ;;  %vm228_vm0 = vcmask 523264   ;;  %v768_v0 = vmov 0.0   ;;  %v240_v1 = vld [vmem:[#allocation6 + $0x38] sm:$0xff]  ;;  %v239_v2 = vld [vmem:[#allocation6 + $0x30] sm:$0xff] }
  0x3e   : > { %229 = vst.msk [vmem:[#allocation2 + $0x8] sm:$0xff] %vm228_vm0, %v768_v0  ;;  %309 = vmatprep.mubr.f32.mxu0 %v768_v0  ;;  %v238_v3 = vld [vmem:[#allocation6 + $0x28] sm:$0xff]  ;;  %269 = vmatprep.subr.mxu0 %v240_v1  ;;  %v237_v4 = vld [vmem:[#allocation6 + $0x20] sm:$0xff]  ;;  %v236_v5 = vld [vmem:[#allocation6 + $0x18] sm:$0xff]  ;;  %vm241_vm1 = vcmask 261120   ;;  %s553_s17 = smul.u32 96, %s913_s4 }
  0x3f   : > { %270 = vmatpush1.msra.mxu0 %v239_v2  ;;  %v235_v6 = vld [vmem:[#allocation6 + $0x10] sm:$0xff]  ;;  %v234_v7 = vld [vmem:[#allocation6 + $0x8] sm:$0xff]  ;;  %v233_v8 = vld [vmem:[#allocation6] sm:$0xff]  ;;  %vm326_vm2 = vcmask 130048   ;;  %s769_s19 = smov 80   ;;  %s770_s22 = smov 112  }
  0x40   : > { %271 = vmatprep.subr.mxu0 %v238_v3  ;;  %v232_v9 = vld [vmem:[%s196_s16] sm:$0xff]  ;;  %s927_s21 = scalar_lea.vmem [#allocation8], %s553_s17  ;;  %s771_s23 = smov 64  }
  0x41   : > { %272 = vmatpush1.msra.mxu0 %v237_v4  ;;  %s772_s24 = smov 96   ;;  %s773_s26 = smov 32  }
  0x42   : > { %273 = vmatprep.subr.mxu0 %v236_v5  ;;  %s774_s27 = smov 48   ;;  %s775_s18 = smov 16  }
  0x43   : > { %274 = vmatpush1.msra.mxu0 %v235_v6  ;;  %s383_s28 = scalar_lea.sflag [#allocation5], %s913_s4 }
  0x44   : > { %275 = vmatprep.subr.mxu0 %v234_v7 }
  0x45   : > { %276 = vmatpush1.msra.mxu0 %v233_v8  ;;  %v231_v11 = vld [vmem:[#allocation2 + $0x8] sm:$0xff] }
  0x46   : > { %536 = vmatmul.mubr.msk.f32.vlgmr.msra.gmra.mxu0 %vm241_vm1, %v232_v9 }
 0x106   : > { %v311_v10 = vpop.f32.mrf.mxu0 }
 0x107   : > { %339 = vrot.lane.b32.xlu1 %v311_v10, %s769_s19  ;;  %327 = vst.msk [vmem:[%s927_s21] sm:$0xff] %vm326_vm2, %v311_v10  ;;  %329 = vrot.lane.b32.xlu0 %v311_v10, %s770_s22 }
 0x108   : > { %v313_v12 = vpop.f32.mrf.mxu0 }
 0x109   : > { %v317_v13 = vadd.f32 %v313_v12, %v231_v11 }
 0x10b   : > { %320 = vst.msk [vmem:[#allocation2 + $0x8] sm:$0xff] %vm228_vm0, %v317_v13  ;;  %344 = vrot.lane.b32.xlu1 %v311_v10, %s771_s23  ;;  %334 = vrot.lane.b32.xlu0 %v311_v10, %s772_s24 }
 0x10f   : > { %354 = vrot.lane.b32.xlu1 %v311_v10, %s773_s26  ;;  %349 = vrot.lane.b32.xlu0 %v311_v10, %s774_s27 }
 0x112   : > { %v325_v14 = vld [vmem:[#allocation2 + $0x8] sm:$0xff] }
 0x113   : > { %544 = vst.msk [vmem:[%s927_s21 + $0x40] sm:$0xff] %vm326_vm2, %v325_v14  ;;  %367 = vrot.lane.b32.xlu1 %v325_v14, %s770_s22  ;;  %359 = vrot.lane.b32.xlu0 %v311_v10, %s775_s18 }
 0x117   : > { %377 = vrot.lane.b32.xlu1 %v325_v14, %s769_s19  ;;  %372 = vrot.lane.b32.xlu0 %v325_v14, %s772_s24 }
 0x179   : > { %v340_v15 = vpop.permute.xlu1 %339  ;;  %v330_v16 = vpop.permute.xlu0 %329 }
 0x17a   : > { %539 = vst.msk [vmem:[%s927_s21 + $0x18] sm:$0xff] %vm326_vm2, %v340_v15  ;;  %537 = vst.msk [vmem:[%s927_s21 + $0x8] sm:$0xff] %vm326_vm2, %v330_v16 }
 0x17d   : > { %v345_v17 = vpop.permute.xlu1 %344  ;;  %v335_v18 = vpop.permute.xlu0 %334 }
 0x17e   : > { %540 = vst.msk [vmem:[%s927_s21 + $0x20] sm:$0xff] %vm326_vm2, %v345_v17  ;;  %538 = vst.msk [vmem:[%s927_s21 + $0x10] sm:$0xff] %vm326_vm2, %v335_v18 }
 0x181   : > { %v355_v19 = vpop.permute.xlu1 %354  ;;  %v350_v20 = vpop.permute.xlu0 %349 }
 0x182   : > { %542 = vst.msk [vmem:[%s927_s21 + $0x30] sm:$0xff] %vm326_vm2, %v355_v19  ;;  %541 = vst.msk [vmem:[%s927_s21 + $0x28] sm:$0xff] %vm326_vm2, %v350_v20 }
 0x185   : > { %v368_v21 = vpop.permute.xlu1 %367  ;;  %v360_v22 = vpop.permute.xlu0 %359 }
 0x186   : > { %545 = vst.msk [vmem:[%s927_s21 + $0x48] sm:$0xff] %vm326_vm2, %v368_v21  ;;  %543 = vst.msk [vmem:[%s927_s21 + $0x38] sm:$0xff] %vm326_vm2, %v360_v22 }
 0x189   : > { %v378_v23 = vpop.permute.xlu1 %377  ;;  %v373_v24 = vpop.permute.xlu0 %372 }
 0x18a   : > { %547 = vst.msk [vmem:[%s927_s21 + $0x58] sm:$0xff] %vm326_vm2, %v378_v23  ;;  %546 = vst.msk [vmem:[%s927_s21 + $0x50] sm:$0xff] %vm326_vm2, %v373_v24 }
 0x18b   : > { %s552_s29 = sshll.u32 %s754_s12, 9  ;;  %s407_s30 = sshll.u32 %s927_s21, 4  ;;  %s408_s30 = int_to_ptr.vmem [resolvable:$true] %s407_s30 }
 0x18c   : > { %s396_s7 = scalar_lea.hbm %s999_s2, %s552_s29  ;;  %s776_s8 = smov 512  }
 0x18d   : > { %560 = sst [smem:[#allocation10]] (%p885_p13), %s776_s8  ;;  %s777_s4 = smov 1024  }
 0x18e   : > { %561 = sst [smem:[#allocation10 + $0x1]] (%p885_p13), %s777_s4  ;;  %s778_s16 = smov 4  }
 0x18f   : > { %562 = sst [smem:[#allocation10 + $0x2]] (%p885_p13), %s778_s16  ;;  %s779_s17 = smov 128  }
 0x190   : > { %563 = sst [smem:[#allocation10 + $0x3]] (%p885_p13), %s779_s17  ;;  %s780_s12 = smov 8  }
 0x191   : > { %564 = sst [smem:[#allocation10 + $0x4]] (%p885_p13), %s779_s17  ;;  %s781_s19 = smov 131072  }
 0x192   : > { %565 = sst [smem:[#allocation10 + $0x5]] (%p885_p13), %s780_s12  ;;  %s782_s21 = smov 0  }
 0x193   : > { %566 = dma.general (%p885_p13), %s408_s30, 1536, %s396_s7, %s383_s28, %s781_s19, [#allocation10], %s782_s21, 0  }
 0x194 PF: > { %s435_s22 = sand.u32 1, %s742_s9   ;;  %p1011_p1 = scmp.ne.s32.totalorder %s1004_s20, 0 }
 0x195   : > { %p1012_p8 = scmp.ge.s32.totalorder %s762_s14, 2  ;;  %s436_s23 = scalar_lea.sflag [#allocation5], %s435_s22 }
 0x197   : > { %p577_p10 = pnand %p1012_p8, %p1011_p1 }
 0x199   : > { %p578_p0 = pneg %p577_p10 }
 0x19b   : > { %737 = dma.done.wait (%p578_p0), %s436_s23, 1536  }
 0x19c   : > { %739 = vsyncadd (%p578_p0), %s436_s23, 4294965760  ;;  %s19_s14 = sadd.s32 1, %s762_s14   ;;  %s1013_s9 = smov %s746_s10 }
 0x19d   : > { %p16_p2 = scmp.ge.s32.totalorder %s19_s14, 4   ;;  %s1014_s10 = smov %s750_s11 }
 0x19e   : > { %s1015_s11 = smov %s894_s15  ;;  %s1016_s12 = smov %s758_s13 }
 0x19f   : > { %s1017_s13 = smov %s1019_s25  ;;  %18 = sbr.rel (!%p16_p2) target bundleno = 7 (0x7), region = 102 }
 0x1a4   :  { %441 = vsyncpa [#allocation4], 1 }
 0x1a5   :  { %443 = vsyncpa [#allocation4 + $0x1], 1 }
 0x1a6   :  { %444 = vsyncpa [#allocation7], 1 }
 0x1a7   :  { %445 = vsyncpa [#allocation5], 1 }
 0x1a8   :  { %447 = vsyncpa [#allocation5 + $0x1], 1 }

</bundles_post_ra>
